<compile_context>
chip_gen: v6e
topology: v6e:2x2x1
jax: 0.10.0
libtpu: 0.0.40
codegen_flags: <defaults>
</compile_context>

<pallas_src>
import functools

import jax
import jax.numpy as jnp
import numpy as np
from jax.experimental import pallas as pl
from jax.experimental.pallas import tpu as pltpu

IGNORE_INDEX = -100
# task weights from the module __init__ (no learnable parameters)
W_ITEM = 1.0            # 'item_prediction'
W_NEXT = 1.0            # 'next_item' -> not in dict, .get(task, 1.0)
W_RATING = 0.3          # 'rating_prediction'
W_PREF = 0.2            # 'user_preference'

_NUM_CORE_SPLITS = 2          # v7x has 2 TCs/chip; harmless extra grid level elsewhere
_ROW_TILE_CAP = 4096          # sanity cap on rows per tile
_OVERHEAD_BYTES_PER_ELEM = 16  # f32 exp intermediate + int32 iota + masks, per tile elem


def _round_up(x, m):
    return (x + m - 1) // m * m


def _vmem_capacity_bytes():
    try:
        return int(pltpu.get_tpu_info().vmem_capacity_bytes)
    except Exception:
        return 64 << 20   # conservative (v7x-sized) fallback


# --------------------------------------------------------------------------
# Kernel 1: gridded masked-LM item cross-entropy -> per-core (sum, count)
# --------------------------------------------------------------------------
def _item_ce_kernel(item_ref, labels_ref, out_ref, acc_s_ref, acc_n_ref,
                    *, n_rows, tiles_per_core):
    c = pl.program_id(0)           # core split (parallel)
    t = pl.program_id(1)           # tile within this core's range (arbitrary)

    @pl.when(t == 0)
    def _init():
        acc_s_ref[...] = jnp.zeros_like(acc_s_ref)
        acc_n_ref[...] = jnp.zeros_like(acc_n_ref)

    tm, v = item_ref.shape
    x = item_ref[...]              # native dtype (bf16 or f32) - no wrapper upcast
    lbl = labels_ref[...]          # (tm, 1) int32

    # Ragged-edge / duplicated-tile masking: logical rows >= n_rows are invalid.
    # (The last tile may be partial, and clamped duplicate tiles are fully masked.)
    g = c * tiles_per_core + t     # logical (unclamped) global tile index
    row = jax.lax.broadcasted_iota(jnp.int32, (tm, 1), 0) + g * tm
    lbl = jnp.where(row < n_rows, lbl, IGNORE_INDEX)
    valid_b = lbl != IGNORE_INDEX  # (tm, 1) bool

    # Row max and one-hot target gather in the NATIVE dtype (both exact);
    # only the exp/logsumexp path is widened to f32.
    m = jnp.max(x, axis=-1, keepdims=True)                          # (tm, 1)
    col = jax.lax.broadcasted_iota(jnp.int32, (tm, v), 1)           # (tm, V)
    tgt = jnp.sum(jnp.where(col == lbl, x, jnp.zeros_like(x)),
                  axis=-1, keepdims=True)                            # (tm, 1), exact
    ex = jnp.exp(x.astype(jnp.float32) - m.astype(jnp.float32))      # (tm, V) f32
    lse = m.astype(jnp.float32) + jnp.log(jnp.sum(ex, axis=-1, keepdims=True))
    # select (not multiply) so garbage in the padded/duplicated rows can't leak NaN/Inf
    loss = jnp.where(valid_b, lse - tgt.astype(jnp.float32), 0.0)    # (tm, 1)

    acc_s_ref[...] += jnp.sum(loss, keepdims=True)
    acc_n_ref[...] += jnp.sum(valid_b.astype(jnp.float32), keepdims=True)

    @pl.when(t == pl.num_programs(1) - 1)
    def _finalize():
        lane = jax.lax.broadcasted_iota(jnp.int32, (1, 8, 128), 2)
        s = acc_s_ref[...].reshape(1, 1, 1)
        n = acc_n_ref[...].reshape(1, 1, 1)
        out_ref[...] = jnp.where(lane == 0, s, jnp.where(lane == 1, n, 0.0))


def _item_ce_partial_sums(item_flat, labels_flat, *, row_tile=None):
    """Returns (sum of per-row CE over valid rows, number of valid rows)."""
    N, V = item_flat.shape
    isz = np.dtype(item_flat.dtype).itemsize
    sub = {4: 8, 2: 16, 1: 32}.get(isz, 8)   # dtype sublane multiple

    vmem_cap = _vmem_capacity_bytes()
    vmem_limit = int(min(vmem_cap - (8 << 20), 112 << 20))

    if row_tile is None:
        # Per-row bytes: double-buffered native input tile + f32 exp intermediate,
        # int32 column iota and masks (counted at ~16 B/elem).
        per_row = 2 * V * isz + _OVERHEAD_BYTES_PER_ELEM * V
        tm = int(0.75 * vmem_limit) // per_row
        tm = max(sub, min(_ROW_TILE_CAP, (tm // sub) * sub))
    else:
        tm = max(sub, _round_up(int(row_tile), sub))
    tm = min(tm, _round_up(N, sub))

    n_tiles = pl.cdiv(N, tm)
    nc = _NUM_CORE_SPLITS if n_tiles >= _NUM_CORE_SPLITS else 1
    tpc = pl.cdiv(n_tiles, nc)     # tiles per core split

    def tile_map(c, t):
        # Clamp so we never request an out-of-range block; the kernel masks the
        # (fully-invalid) duplicated tiles by logical row index.
        return (jnp.minimum(c * tpc + t, n_tiles - 1), 0)

    kern = functools.partial(_item_ce_kernel, n_rows=N, tiles_per_core=tpc)

    cost = pl.CostEstimate(
        flops=6 * N * V,
        transcendentals=N * V,
        bytes_accessed=int(N * V * isz + N * 4 + nc * 8 * 128 * 4))

    partials = pl.pallas_call(
        kern,
        out_shape=jax.ShapeDtypeStruct((nc, 8, 128), jnp.float32),
        grid_spec=pltpu.PrefetchScalarGridSpec(
            num_scalar_prefetch=0,
            grid=(nc, tpc),
            in_specs=[
                pl.BlockSpec((tm, V), tile_map),
                pl.BlockSpec((tm, 1), tile_map),
            ],
            out_specs=pl.BlockSpec((1, 8, 128), lambda c, t: (c, 0, 0)),
            scratch_shapes=[pltpu.VMEM((1, 1), jnp.float32),   # running CE sum
                            pltpu.VMEM((1, 1), jnp.float32)],  # running valid count
        ),
        compiler_params=pltpu.CompilerParams(
            dimension_semantics=("parallel", "arbitrary"),
            vmem_limit_bytes=vmem_limit,
        ),
        cost_estimate=cost,
    )(item_flat, labels_flat)

    item_sum = jnp.sum(partials[:, 0, 0])
    item_cnt = jnp.sum(partials[:, 0, 1])
    return item_sum, item_cnt


# --------------------------------------------------------------------------
# Kernel 2: small per-batch losses (next-item CE, rating CE, MSE) + total
# --------------------------------------------------------------------------
def _ce_sum_count(logits_f32, targets):
    n, c = logits_f32.shape
    m = jnp.max(logits_f32, axis=-1, keepdims=True)
    t = logits_f32 - m
    lse_shift = jnp.log(jnp.sum(jnp.exp(t), axis=-1, keepdims=True))
    col = jax.lax.broadcasted_iota(jnp.int32, (n, c), 1)
    tgt_shift = jnp.sum(jnp.where(col == targets, t, 0.0), axis=-1, keepdims=True)
    valid_b = targets != IGNORE_INDEX
    loss = jnp.where(valid_b, lse_shift - tgt_shift, 0.0)
    return (jnp.sum(loss, keepdims=True),
            jnp.sum(valid_b.astype(jnp.float32), keepdims=True))


def _small_tasks_kernel(item_sum_ref, item_cnt_ref,
                        last_item_ref, tgt_item_ref,
                        rating_ref, tgt_rating_ref,
                        pref_ref, emb_ref, out_ref):
    # NOTE: if every label is IGNORE_INDEX the count is 0 and this is 0/0 -> NaN,
    # matching the pure-JAX reference (and torch's nan for an all-ignored batch).
    item_loss = item_sum_ref[...] / item_cnt_ref[...]                 # (1,1)

    s2, n2 = _ce_sum_count(last_item_ref[...].astype(jnp.float32), tgt_item_ref[...])
    next_loss = s2 / n2
    s3, n3 = _ce_sum_count(rating_ref[...].astype(jnp.float32), tgt_rating_ref[...])
    rating_loss = s3 / n3

    diff = pref_ref[...].astype(jnp.float32) - emb_ref[...].astype(jnp.float32)
    mse = jnp.sum(diff * diff, keepdims=True) / float(
        pref_ref.shape[0] * pref_ref.shape[1])

    total = (W_ITEM * item_loss + W_NEXT * next_loss
             + W_RATING * rating_loss + W_PREF * mse)

    lane = jax.lax.broadcasted_iota(jnp.int32, (1, 8), 1)
    out = jnp.where(lane == 0, item_loss, 0.0)
    out = jnp.where(lane == 1, next_loss, out)
    out = jnp.where(lane == 2, rating_loss, out)
    out = jnp.where(lane == 3, mse, out)
    out = jnp.where(lane == 4, total, out)
    out_ref[...] = out


# --------------------------------------------------------------------------
# Public wrapper
# --------------------------------------------------------------------------
def multi_task_loss(item_logits, rating_logits, user_pref_logits,
                    labels, target_items, target_ratings, user_embeddings,
                    *, row_tile=None):
    B, S, V = item_logits.shape
    N = B * S

    # glue (reshape / slice) in plain JAX; NO dtype upcast and NO padding here —
    # native dtype on the HBM wire, ragged edge handled in-kernel.
    item_flat = item_logits.reshape(N, V)
    labels_flat = labels.reshape(N, 1).astype(jnp.int32)

    item_sum, item_cnt = _item_ce_partial_sums(item_flat, labels_flat,
                                               row_tile=row_tile)

    last_item = item_logits[:, -1, :]
    tgt_item = target_items.reshape(B, 1).astype(jnp.int32)
    last_rating = rating_logits[:, -1, :]
    tgt_rating = target_ratings.reshape(B, 1).astype(jnp.int32)
    pref = user_pref_logits[:, -1, :]
    emb = user_embeddings

    # TODO(synk): if B*V ever gets huge, row-tile this kernel too.
    out = pl.pallas_call(
        _small_tasks_kernel,
        out_shape=jax.ShapeDtypeStruct((1, 8), jnp.float32),
    )(item_sum.astype(jnp.float32).reshape(1, 1),
      item_cnt.astype(jnp.float32).reshape(1, 1),
      last_item, tgt_item, last_rating, tgt_rating, pref, emb)

    return {
        "item_prediction": out[0, 0],
        "next_item": out[0, 1],
        "rating_prediction": out[0, 2],
        "user_preference": out[0, 3],
        "total": out[0, 4],
    }


# ---------- pure-JAX reference (for correctness check) ----------
def _ce_ref(logits, targets):
    logits = logits.astype(jnp.float32)
    lse = jax.scipy.special.logsumexp(logits, axis=-1)
    tgt = jnp.take_along_axis(
        logits, jnp.clip(targets, 0, logits.shape[-1] - 1)[:, None], axis=-1)[:, 0]
    valid = targets != IGNORE_INDEX
    loss = jnp.where(valid, lse - tgt, 0.0)
    return jnp.sum(loss) / jnp.sum(valid)


def multi_task_loss_ref(item_logits, rating_logits, user_pref_logits,
                        labels, target_items, target_ratings, user_embeddings):
    B, S, V = item_logits.shape
    item_loss = _ce_ref(item_logits.reshape(B * S, V), labels.reshape(-1))
    next_loss = _ce_ref(item_logits[:, -1, :], target_items)
    rating_loss = _ce_ref(rating_logits[:, -1, :], target_ratings)
    mse = jnp.mean((user_pref_logits[:, -1, :].astype(jnp.float32)
                    - user_embeddings.astype(jnp.float32)) ** 2)
    total = (W_ITEM * item_loss + W_NEXT * next_loss
             + W_RATING * rating_loss + W_PREF * mse)
    return {
        "item_prediction": item_loss,
        "next_item": next_loss,
        "rating_prediction": rating_loss,
        "user_preference": mse,
        "total": total,
    }


def _check(got, ref, rtol, atol):
    for name in ("item_prediction", "next_item", "rating_prediction",
                 "user_preference", "total"):
        np.testing.assert_allclose(np.asarray(got[name]), np.asarray(ref[name]),
                                   rtol=rtol, atol=atol)


if __name__ == "__main__":
    key = jax.random.PRNGKey(0)
    # S=9 so N=18 is NOT a multiple of the row tile: exercises the in-kernel
    # ragged-edge masking (no wrapper padding) and the clamped duplicate tile
    # of the 2-way core split.
    B, S, V, R, D = 2, 9, 128, 5, 32
    ks = jax.random.split(key, 7)

    item_logits = jax.random.normal(ks[0], (B, S, V), jnp.float32)
    rating_logits = jax.random.normal(ks[1], (B, S, R), jnp.float32)
    user_pref_logits = jax.random.normal(ks[2], (B, S, D), jnp.float32)
    labels = jax.random.randint(ks[3], (B, S), 0, V).astype(jnp.int32)
    labels = labels.at[:, :2].set(IGNORE_INDEX)          # exercise ignore_index=-100
    target_items = jax.random.randint(ks[4], (B,), 0, V).astype(jnp.int32)
    target_ratings = jax.random.randint(ks[5], (B,), 0, R).astype(jnp.int32)
    user_embeddings = jax.random.normal(ks[6], (B, D), jnp.float32)

    # f32 path, forced small row tile: 3 tiles (last one ragged) split over the
    # 2-way "parallel" core axis + multi-step accumulator grid.
    losses = multi_task_loss(item_logits, rating_logits, user_pref_logits,
                             labels, target_items, target_ratings, user_embeddings,
                             row_tile=8)
    jax.block_until_ready(losses)
    ref = multi_task_loss_ref(item_logits, rating_logits, user_pref_logits,
                              labels, target_items, target_ratings, user_embeddings)
    _check(losses, ref, rtol=1e-5, atol=1e-5)

    # bf16-on-the-wire path (native-dtype DMA + native bf16 max/gather, f32 exp),
    # default (VMEM-budget-derived) tile sizing.
    item_bf = item_logits.astype(jnp.bfloat16)
    rating_bf = rating_logits.astype(jnp.bfloat16)
    pref_bf = user_pref_logits.astype(jnp.bfloat16)
    losses_bf = multi_task_loss(item_bf, rating_bf, pref_bf,
                                labels, target_items, target_ratings, user_embeddings)
    jax.block_until_ready(losses_bf)
    ref_bf = multi_task_loss_ref(item_bf, rating_bf, pref_bf,
                                 labels, target_items, target_ratings, user_embeddings)
    _check(losses_bf, ref_bf, rtol=1e-4, atol=1e-4)

    print("KERNEL_OK")
</pallas_src>

<mosaic_0001>
module attributes {stable_mosaic.version = 11 : i64} {
  func.func @_item_ce_kernel(%arg0: i32, %arg1: i32, %arg2: memref<8x128xf32, #tpu.memory_space<vmem>>, %arg3: memref<8x1xi32, #tpu.memory_space<vmem>>, %arg4: memref<1x8x128xf32, #tpu.memory_space<vmem>>, %arg5: memref<1x1xf32, #tpu.memory_space<vmem>>, %arg6: memref<1x1xf32, #tpu.memory_space<vmem>>) attributes {dimension_semantics = [#tpu.dimension_semantics<parallel>, #tpu.dimension_semantics<arbitrary>], iteration_bounds = array<i64: 2, 2>, scalar_prefetch = 0 : i64, scratch_operands = 2 : i64, tpu.core_type = #tpu.core_type<tc>, window_params = [{transform_indices = @transform_0, window_bounds = array<i64: 8, 128>}, {transform_indices = @transform_1, window_bounds = array<i64: 8, 1>}, {transform_indices = @transform_2, window_bounds = array<i64: 1, 8, 128>}]} {
    %c0_i32 = arith.constant 0 : i32
    %0 = arith.cmpi eq, %arg1, %c0_i32 : i32
    %1 = arith.extui %0 : i1 to i32
    %c0_i32_0 = arith.constant 0 : i32
    %2 = arith.cmpi ne, %1, %c0_i32_0 : i32
    scf.if %2 {
      %cst_20 = arith.constant 0.000000e+00 : f32
      %57 = vector.broadcast %cst_20 : f32 to vector<1x1xf32>
      %c0_21 = arith.constant 0 : index
      %c0_22 = arith.constant 0 : index
      %58 = vector.load %arg5[%c0_21, %c0_22] : memref<1x1xf32, #tpu.memory_space<vmem>>, vector<1x1xf32>
      tpu.vector_store %arg5[%c0_21, %c0_22], %57 {strides = array<i32>} : memref<1x1xf32, #tpu.memory_space<vmem>>, vector<1x1xf32>,
      %cst_23 = arith.constant 0.000000e+00 : f32
      %59 = vector.broadcast %cst_23 : f32 to vector<1x1xf32>
      %c0_24 = arith.constant 0 : index
      %c0_25 = arith.constant 0 : index
      %60 = vector.load %arg6[%c0_24, %c0_25] : memref<1x1xf32, #tpu.memory_space<vmem>>, vector<1x1xf32>
      tpu.vector_store %arg6[%c0_24, %c0_25], %59 {strides = array<i32>} : memref<1x1xf32, #tpu.memory_space<vmem>>, vector<1x1xf32>,
    } else {
    }
    %c0 = arith.constant 0 : index
    %c0_1 = arith.constant 0 : index
    %3 = vector.load %arg2[%c0, %c0_1] : memref<8x128xf32, #tpu.memory_space<vmem>>, vector<8x128xf32>
    %c0_2 = arith.constant 0 : index
    %c0_3 = arith.constant 0 : index
    %4 = vector.load %arg3[%c0_2, %c0_3] : memref<8x1xi32, #tpu.memory_space<vmem>>, vector<8x1xi32>
    %c2_i32 = arith.constant 2 : i32
    %5 = arith.muli %arg0, %c2_i32 : i32
    %6 = arith.addi %5, %arg1 : i32
    %7 = tpu.iota {dimensions = array<i32: 0>} : vector<8x1xi32>
    %c8_i32 = arith.constant 8 : i32
    %8 = arith.muli %6, %c8_i32 : i32
    %9 = vector.broadcast %8 : i32 to vector<8x1xi32>
    %10 = arith.addi %7, %9 : vector<8x1xi32>
    %c18_i32 = arith.constant 18 : i32
    %11 = vector.broadcast %c18_i32 : i32 to vector<8x1xi32>
    %12 = arith.cmpi slt, %10, %11 : vector<8x1xi32>
    %c-100_i32 = arith.constant -100 : i32
    %13 = vector.broadcast %c-100_i32 : i32 to vector<8x1xi32>
    %14 = arith.select %12, %4, %13 : vector<8x1xi1>, vector<8x1xi32>
    %c-100_i32_4 = arith.constant -100 : i32
    %15 = vector.broadcast %c-100_i32_4 : i32 to vector<8x1xi32>
    %16 = arith.cmpi ne, %14, %15 : vector<8x1xi32>
    %cst = arith.constant dense<0xFF800000> : vector<8xf32>
    %17 = vector.multi_reduction <maximumf>, %3, %cst [1] : vector<8x128xf32> to vector<8xf32>
    %18 = vector.shape_cast %17 : vector<8xf32> to vector<8x1xf32>
    %19 = tpu.iota {dimensions = array<i32: 1>} : vector<8x128xi32>
    %20 = vector.broadcast %14 : vector<8x1xi32> to vector<8x128xi32>
    %21 = arith.cmpi eq, %19, %20 : vector<8x128xi32>
    %cst_5 = arith.constant 0.000000e+00 : f32
    %22 = vector.broadcast %cst_5 : f32 to vector<8x128xf32>
    %23 = arith.select %21, %3, %22 : vector<8x128xi1>, vector<8x128xf32>
    %cst_6 = arith.constant dense<0.000000e+00> : vector<8xf32>
    %24 = vector.multi_reduction <add>, %23, %cst_6 [1] : vector<8x128xf32> to vector<8xf32>
    %25 = vector.shape_cast %24 : vector<8xf32> to vector<8x1xf32>
    %26 = vector.broadcast %18 : vector<8x1xf32> to vector<8x128xf32>
    %27 = arith.subf %3, %26 : vector<8x128xf32>
    %28 = math.exp %27 : vector<8x128xf32>
    %cst_7 = arith.constant dense<0.000000e+00> : vector<8xf32>
    %29 = vector.multi_reduction <add>, %28, %cst_7 [1] : vector<8x128xf32> to vector<8xf32>
    %30 = vector.shape_cast %29 : vector<8xf32> to vector<8x1xf32>
    %31 = math.log %30 : vector<8x1xf32>
    %32 = arith.addf %18, %31 : vector<8x1xf32>
    %33 = arith.subf %32, %25 : vector<8x1xf32>
    %cst_8 = arith.constant 0.000000e+00 : f32
    %34 = vector.broadcast %cst_8 : f32 to vector<8x1xf32>
    %35 = arith.select %16, %33, %34 : vector<8x1xi1>, vector<8x1xf32>
    %c0_9 = arith.constant 0 : index
    %c0_10 = arith.constant 0 : index
    %36 = vector.load %arg5[%c0_9, %c0_10] : memref<1x1xf32, #tpu.memory_space<vmem>>, vector<1x1xf32>
    %37 = vector.shape_cast %35 : vector<8x1xf32> to vector<1x8x1xf32>
    %cst_11 = arith.constant dense<0.000000e+00> : vector<1xf32>
    %38 = vector.multi_reduction <add>, %37, %cst_11 [1, 2] : vector<1x8x1xf32> to vector<1xf32>
    %39 = vector.shape_cast %38 : vector<1xf32> to vector<1x1x1xf32>
    %40 = vector.extract %39[0, 0, 0] : f32 from vector<1x1x1xf32>
    %41 = vector.broadcast %40 : f32 to vector<1x1xf32>
    %42 = arith.addf %36, %41 : vector<1x1xf32>
    %c0_12 = arith.constant 0 : index
    %c0_13 = arith.constant 0 : index
    %43 = vector.load %arg5[%c0_12, %c0_13] : memref<1x1xf32, #tpu.memory_space<vmem>>, vector<1x1xf32>
    tpu.vector_store %arg5[%c0_12, %c0_13], %42 {strides = array<i32>} : memref<1x1xf32, #tpu.memory_space<vmem>>, vector<1x1xf32>,
    %c0_14 = arith.constant 0 : index
    %c0_15 = arith.constant 0 : index
    %44 = vector.load %arg6[%c0_14, %c0_15] : memref<1x1xf32, #tpu.memory_space<vmem>>, vector<1x1xf32>
    %45 = arith.extui %16 : vector<8x1xi1> to vector<8x1xi32>
    %46 = arith.sitofp %45 : vector<8x1xi32> to vector<8x1xf32>
    %47 = vector.shape_cast %46 : vector<8x1xf32> to vector<1x8x1xf32>
    %cst_16 = arith.constant dense<0.000000e+00> : vector<1xf32>
    %48 = vector.multi_reduction <add>, %47, %cst_16 [1, 2] : vector<1x8x1xf32> to vector<1xf32>
    %49 = vector.shape_cast %48 : vector<1xf32> to vector<1x1x1xf32>
    %50 = vector.extract %49[0, 0, 0] : f32 from vector<1x1x1xf32>
    %51 = vector.broadcast %50 : f32 to vector<1x1xf32>
    %52 = arith.addf %44, %51 : vector<1x1xf32>
    %c0_17 = arith.constant 0 : index
    %c0_18 = arith.constant 0 : index
    %53 = vector.load %arg6[%c0_17, %c0_18] : memref<1x1xf32, #tpu.memory_space<vmem>>, vector<1x1xf32>
    tpu.vector_store %arg6[%c0_17, %c0_18], %52 {strides = array<i32>} : memref<1x1xf32, #tpu.memory_space<vmem>>, vector<1x1xf32>,
    %c1_i32 = arith.constant 1 : i32
    %54 = arith.cmpi eq, %arg1, %c1_i32 : i32
    %55 = arith.extui %54 : i1 to i32
    %c0_i32_19 = arith.constant 0 : i32
    %56 = arith.cmpi ne, %55, %c0_i32_19 : i32
    scf.if %56 {
      %57 = tpu.iota {dimensions = array<i32: 2>} : vector<1x8x128xi32>
      %c0_20 = arith.constant 0 : index
      %c0_21 = arith.constant 0 : index
      %58 = vector.load %arg5[%c0_20, %c0_21] : memref<1x1xf32, #tpu.memory_space<vmem>>, vector<1x1xf32>
      %59 = vector.shape_cast %58 : vector<1x1xf32> to vector<1x1x1xf32>
      %c0_22 = arith.constant 0 : index
      %c0_23 = arith.constant 0 : index
      %60 = vector.load %arg6[%c0_22, %c0_23] : memref<1x1xf32, #tpu.memory_space<vmem>>, vector<1x1xf32>
      %61 = vector.shape_cast %60 : vector<1x1xf32> to vector<1x1x1xf32>
      %c0_i32_24 = arith.constant 0 : i32
      %62 = vector.broadcast %c0_i32_24 : i32 to vector<1x8x128xi32>
      %63 = arith.cmpi eq, %57, %62 : vector<1x8x128xi32>
      %c1_i32_25 = arith.constant 1 : i32
      %64 = vector.broadcast %c1_i32_25 : i32 to vector<1x8x128xi32>
      %65 = arith.cmpi eq, %57, %64 : vector<1x8x128xi32>
      %cst_26 = arith.constant 0.000000e+00 : f32
      %66 = vector.shape_cast %61 : vector<1x1x1xf32> to vector<1x1x1xf32>
      %67 = vector.broadcast %66 : vector<1x1x1xf32> to vector<1x8x128xf32>
      %68 = vector.broadcast %cst_26 : f32 to vector<1x8x128xf32>
      %69 = arith.select %65, %67, %68 : vector<1x8x128xi1>, vector<1x8x128xf32>
      %70 = vector.shape_cast %59 : vector<1x1x1xf32> to vector<1x1x1xf32>
      %71 = vector.broadcast %70 : vector<1x1x1xf32> to vector<1x8x128xf32>
      %72 = arith.select %63, %71, %69 : vector<1x8x128xi1>, vector<1x8x128xf32>
      %c0_27 = arith.constant 0 : index
      %c0_28 = arith.constant 0 : index
      %c0_29 = arith.constant 0 : index
      %73 = vector.load %arg4[%c0_27, %c0_28, %c0_29] : memref<1x8x128xf32, #tpu.memory_space<vmem>>, vector<1x8x128xf32>
      tpu.vector_store %arg4[%c0_27, %c0_28, %c0_29], %72 {strides = array<i32>} : memref<1x8x128xf32, #tpu.memory_space<vmem>>, vector<1x8x128xf32>,
    } else {
    }
    return
  }
  func.func @transform_0(%arg0: i32, %arg1: i32) -> (i32, i32) {
    %c2_i32 = arith.constant 2 : i32
    %0 = arith.muli %arg0, %c2_i32 : i32
    %1 = arith.addi %0, %arg1 : i32
    %c2_i32_0 = arith.constant 2 : i32
    %2 = arith.minsi %1, %c2_i32_0 : i32
    %c0_i32 = arith.constant 0 : i32
    %c0_i32_1 = arith.constant 0 : i32
    return %2, %c0_i32 : i32, i32
  }
  func.func @transform_1(%arg0: i32, %arg1: i32) -> (i32, i32) {
    %c2_i32 = arith.constant 2 : i32
    %0 = arith.muli %arg0, %c2_i32 : i32
    %1 = arith.addi %0, %arg1 : i32
    %c2_i32_0 = arith.constant 2 : i32
    %2 = arith.minsi %1, %c2_i32_0 : i32
    %c0_i32 = arith.constant 0 : i32
    %c0_i32_1 = arith.constant 0 : i32
    return %2, %c0_i32 : i32, i32
  }
  func.func @transform_2(%arg0: i32, %arg1: i32) -> (i32, i32, i32) {
    %c0_i32 = arith.constant 0 : i32
    %c0_i32_0 = arith.constant 0 : i32
    %c0_i32_1 = arith.constant 0 : i32
    return %arg0, %c0_i32, %c0_i32_0 : i32, i32, i32
  }
}

</mosaic_0001>

<bundles_post_ra>
// kernel: tpu_custom_call.1
= control target key start
LH: loop header
LB: loop body
LE: loop exit
PB: predicated region body
PF: predicated region fallthrough
CT: control target
= control target key end

     0   :  { %7 = vsyncpa [#allocation5], 0  ;;  %s791_s0 = inlined_call_operand.vmem [shape: f32[18,128], index: 0, kind: input, shape index: {}]   ;;  %s792_s1 = inlined_call_operand.vmem [shape: s32[18,1], index: 1, kind: input, shape index: {}]   ;;  %s793_s2 = inlined_call_operand.hbm [shape: f32[2,8,128], index: 2, kind: output, shape index: {}]  }
   0x1   :  { %9 = vsyncpa [#allocation5 + $0x1], 0  ;;  %s651_s9 = smov 0   ;;  %s653_s10 = smov 0  }
   0x2   :  { %s655_s11 = smov 0   ;;  %s657_s12 = smov 0  }
   0x3   :  { %s659_s13 = smov 0   ;;  %s661_s14 = smov 0  }
   0x4   :  { %s663_s15 = smov 0   ;;  %s665_s16 = smov 0  }
   0x5 LB: > { %s421_s17 = sadd.s32 4294967295, %s629_s16   ;;  %s422_s18 = sadd.s32 4294967294, %s629_s16   ;;  %s629_s16 = sphi %s665_s16, %s15_s16   ;;  %s625_s15 = sphi %s663_s15, %s802_s15   ;;  %s621_s14 = sphi %s661_s14, %s801_s14   ;;  %s617_s13 = sphi %s659_s13, %s800_s13   ;;  %s613_s12 = sphi %s657_s12, %s799_s12   ;;  %s609_s11 = sphi %s655_s11, %s798_s11   ;;  %s605_s10 = sphi %s653_s10, %s797_s10   ;;  %s601_s9 = sphi %s651_s9, %s796_s9  }
   0x6   : > { %s24_s19 = sadd.s32 1, %s621_s14  ;;  %s27_s20 = sadd.s32 1, %s625_s15 }
   0x7   : > { %p25_p0 = scmp.ge.s32.totalorder %s24_s19, 2  ;;  %p112_p1 = scmp.ne.s32.totalorder %s609_s11, %s605_s10 }
   0x8   : > { %p113_p2 = scmp.eq.s32.totalorder %s421_s17, 3  ;;  %p118_p4 = scmp.ne.s32.totalorder %s605_s10, %s601_s9 }
   0x9   : > { %s804_s19 = smov (%p25_p0, %s24_s19), 0  ;;  %s806_s20 = smov (!%p25_p0, %s27_s20), %s625_s15 }
   0xa   : > { %p700_p3 = por %p113_p2, %p112_p1  ;;  %p29_p5 = scmp.ge.s32.totalorder %s806_s20, 2 }
   0xb   : > { %p119_p6 = scmp.eq.s32.totalorder %s422_s18, 3  ;;  %p429_p7 = scmp.ge.s32.totalorder %s629_s16, 1 }
   0xc   : > { %p167_p8 = scmp.lt.s32.totalorder %s629_s16, 5  ;;  %s808_s20 = smov (%p29_p5, %s806_s20), 0 }
   0xd   : > { %p710_p9 = por %p119_p6, %p118_p4  ;;  %s99_s23 = ssub.s32 %s625_s15, %s808_s20 }
   0xe   : > { %p168_p10 = pnand %p429_p7, %p167_p8  ;;  %s102_s24 = sadd.s32 1, %s609_s11 }
   0xf   : > { %p100_p11 = scmp.eq.s32.totalorder %s99_s23, 0  ;;  %s197_s26 = sand.u32 (!%p168_p10), 1, %s605_s10  }
  0x10   : > { %171 = sbr.rel (%p168_p10) target bundleno = 714 (0x2ca), region = 28  ;;  %s431_s27 = sshll.u32 (!%p168_p10), %s617_s13, 1 }
  0x11   : > { %s718_s25 = scalar_select %p100_p11, %s609_s11, %s102_s24  }
  0x12   : > { %s724_s28 = sshll.u32 (!%p168_p10), %s197_s26, 3  ;;  %s201_s29 = sadd.s32 (!%p168_p10), %s613_s12, %s431_s27 }
  0x13   : > { %p202_p12 = scmp.lt.s32.totalorder (!%p168_p10), %s201_s29, 2  ;;  %s199_s18 = scalar_lea.vmem (!%p168_p10), [#allocation4], %s724_s28 }
  0x14   : > { %p441_p13 = scmp.ne.s32.totalorder (!%p168_p10), %s613_s12, 0 }
  0x15   : > { %s203_s30 = scalar_select %p202_p12, %s201_s29, 2 }
  0x16   : > { %227 = sbr.rel (%p441_p13) target bundleno = 29 (0x1d), region = 32 }
  0x17   : > { %s810_s30 = smov (!%p202_p12, %s203_s30), 2 }
  0x18   : > { %s435_s3 = sshll.u32 %s810_s30, 3 }
  0x19   : > { %s207_s6 = scalar_lea.vmem %s791_s0, %s435_s3  ;;  %s219_s17 = scalar_lea.vmem %s792_s1, %s435_s3 }
  0x1b   : > { %vm228_vm0 = vcmask 0   ;;  %v631_v0 = vmov 0.0  }
  0x1c   : > { %229 = vst.msk [vmem:[#allocation2] sm:$0x1] %vm228_vm0, %v631_v0  ;;  %230 = vst.msk [vmem:[#allocation3] sm:$0x1] %vm228_vm0, %v631_v0 }
  0x1d PF: > { %v231_v1 = vld [vmem:[%s207_s6] sm:$0xff]  ;;  %v632_v2 = vmov 0   ;;  %v235_v3 = vlaneseq  ;;  %s443_s23 = sshll.u32 %s201_s29, 3  ;;  %vm265_vm4 = vcmask 7168   ;;  %v633_v23 = vmov 0.0   ;;  %p445_p0 = scmp.ne.s32.totalorder %s613_s12, 1 }
  0x1e   : > { %243 = vmax.xlane.f32.xlu0 %v231_v1  ;;  %v238_v5 = vstv %s443_s23  ;;  %v232_v7 = vld [vmem:[%s219_s17] sm:$0xff]  ;;  %vm278_vm5 = vcmask 0  }
  0x1f   : > { %531 = vset.pattern.permute.xlu0 %v632_v2  ;;  %v236_v4 = vshrl.u32 %v235_v3, 7  ;;  %v735_v12 = vand.u32 127, %v235_v3 }
  0x21   : > { %v239_v6 = vadd.s32 %v238_v5, %v236_v4 }
  0x23   : > { %vm240_vm1 = vcmp.lt.s32.totalorder %v239_v6, 18  ;;  %v264_v41 = vld [vmem:[#allocation2] sm:$0x1]  ;;  %v280_v44 = vld [vmem:[#allocation3] sm:$0x1] }
  0x24   : > { %v241_v8 = vsel %vm240_vm1, %v232_v7, 4294967196 }
  0x25   : > { %vm242_vm3 = vcmp.ne.s32.totalorder %v241_v8, 4294967196 }
  0x26   : > { %v444_v24 = vsel %vm242_vm3, 1.0, %v633_v23 }
  0x27   : > { %v283_v26 = vsel %vm265_vm4, %v444_v24, 0.0 }
  0x34   : > { %248 = vperm.xlu0 %531, %v241_v8  }
  0xa7   : > { %v244_v9 = vpop.xlane.xlu0 %243 }
  0xa8   : > { %v254_v10 = vsub.f32 %v231_v1, %v244_v9 }
  0xaa   : > { %v255_v11 = vmul.f32 1.442695, %v254_v10 }
  0xac   : > { %532 = vpow2.f32 %v255_v11 }
  0xaf   : > { %v249_v13 = vpop.permute.xlu0 %248 }
  0xb0   : > { %vm250_vm2 = vcmp.eq.s32.totalorder %v735_v12, %v249_v13 }
  0xb1   : > { %v251_v15 = vsel %vm250_vm2, %v231_v1, 0.0 }
  0xb9   : > { %v533_v14 = vpop.eup %532 }
  0xba   : > { %257 = vadd.xlane.f32.xlu1 %v533_v14 }
  0xbe   : > { %252 = vadd.xlane.f32.xlu1 %v251_v15 }
 0x143   : > { %v258_v16 = vpop.xlane.xlu1 %257 }
 0x144   : > { %534 = vlog2.f32 %v258_v16 }
 0x147   : > { %v253_v19 = vpop.xlane.xlu1 %252 }
 0x151   : > { %v535_v17 = vpop.eup %534 }
 0x152   : > { %v260_v18 = vmul.f32 0.6931472, %v535_v17 }
 0x154   : > { %v261_v20 = vadd.f32 %v260_v18, %v244_v9 }
 0x156   : > { %v262_v21 = vsub.f32 %v261_v20, %v253_v19 }
 0x158   : > { %v263_v22 = vsel %vm242_vm3, %v262_v21, 0.0 }
 0x159   : > { %v266_v25 = vsel %vm265_vm4, %v263_v22, 0.0 }
 0x15a   : > { %267 = vadd.xlane.f32.xlu1 %v266_v25 }
 0x15e   : > { %284 = vadd.xlane.f32.xlu1 %v283_v26 }
 0x1e3   : > { %v268_v27 = vpop.xlane.xlu1 %267 }
 0x1e4   : > { %v269_v28 = vrot.slane %v268_v27, 4 }
 0x1e6   : > { %v270_v29 = vadd.f32 %v269_v28, %v268_v27 }
 0x1e7   : > { %v285_v30 = vpop.xlane.xlu1 %284 }
 0x1e8   : > { %v271_v31 = vrot.slane %v270_v29, 2  ;;  %v286_v32 = vrot.slane %v285_v30, 4 }
 0x1ea   : > { %v287_v33 = vadd.f32 %v286_v32, %v285_v30  ;;  %v272_v34 = vadd.f32 %v271_v31, %v270_v29 }
 0x1ec   : > { %v288_v35 = vrot.slane %v287_v33, 2  ;;  %v273_v36 = vrot.slane %v272_v34, 1 }
 0x1ee   : > { %v289_v37 = vadd.f32 %v288_v35, %v287_v33  ;;  %v274_v38 = vadd.f32 %v273_v36, %v272_v34 }
 0x1f0   : > { %452 = vpush %v274_v38  ;;  %v290_v39 = vrot.slane %v289_v37, 1 }
 0x1f2   : > { %v291_v40 = vadd.f32 %v290_v39, %v289_v37 }
 0x1f4   : > { %454 = vpush %v291_v40 }
 0x221   : > { %s453_s24 = spop %452 }
 0x222   : > { %v276_v42 = vstv %s453_s24 }
 0x223   : > { %v277_v43 = vadd.f32 %v276_v42, %v264_v41 }
 0x225   : > { %279 = vst.msk [vmem:[#allocation2] sm:$0x1] %vm278_vm5, %v277_v43  ;;  %s455_s27 = spop %454  ;;  %299 = sbr.rel (%p445_p0) target bundleno = 691 (0x2b3), region = 36 }
 0x226   : > { %v293_v45 = vstv %s455_s27 }
 0x227   : > { %v294_v46 = vadd.f32 %v293_v45, %v280_v44 }
 0x229   : > { %295 = vst.msk [vmem:[#allocation3] sm:$0x1] %vm278_vm5, %v294_v46 }
 0x22a   : > { %v634_v48 = vmov 0   ;;  %vm303_vm6 = vcmp.eq.s32.totalorder %v735_v12, 1  ;;  %vm302_vm7 = vcmp.eq.s32.totalorder %v735_v12, 0 }
 0x22b   : > { %536 = vset.pattern.permute.xlu0 %v634_v48 }
 0x22c   : > { %v447_v49 = vld [vmem:[#allocation2] ss:$0 sm:$0xff] }
 0x230   : > { %v446_v47 = vld [vmem:[#allocation3] ss:$0 sm:$0xff] }
 0x231   : > { %310 = vperm.xlu0 %536, %v446_v47  }
 0x235   : > { %320 = vperm.xlu0 %536, %v447_v49  }
 0x2ac   : > { %v311_v50 = vpop.permute.xlu0 %310 }
 0x2ad   : > { %v313_v51 = vsel %vm303_vm6, %v311_v50, 0.0 }
 0x2b0   : > { %v321_v52 = vpop.permute.xlu0 %320 }
 0x2b1   : > { %v323_v53 = vsel %vm302_vm7, %v321_v52, %v313_v51 }
 0x2b2   : > { %324 = vst [vmem:[%s199_s18] sm:$0xff] %v323_v53 }
 0x2b3 PF: > { %s449_s12 = sshll.u32 %s617_s13, 7  ;;  %s339_s4 = sshll.u32 %s199_s18, 4  ;;  %s340_s4 = int_to_ptr.vmem [resolvable:$true] %s339_s4 }
 0x2b4   : > { %s337_s3 = scalar_lea.hbm %s793_s2, %s449_s12  ;;  %s326_s5 = scalar_lea.sflag [#allocation5], %s197_s26 }
 0x2b5   : > { %s537_s6 = scalar_lea.vmem %s340_s4, 128  ;;  %s635_s7 = smov [#allocation4]  }
 0x2b6   : > { %p538_p1 = scmp.ne.s32.totalorder %s340_s4, %s537_s6  ;;  %s541_s8 = sshll.u32 %s635_s7, 4  ;;  %s542_s8 = int_to_ptr.vmem [resolvable:$false] %s541_s8 }
 0x2b7   : > { %s543_s17 = scalar_lea.vmem %s542_s8, 256  ;;  %p544_p5 = scmp.lt.s32.totalorder %s340_s4, %s542_s8 }
 0x2b8   : > { %p539_p2 = pnand %p538_p1, %p700_p3  ;;  %p545_p6 = scmp.lt.s32.totalorder %s543_s17, %s537_s6 }
 0x2ba   : > { %p540_p4 = pneg %p539_p2  ;;  %p546_p7 = por %p545_p6, %p544_p5 }
 0x2bc   : > { %p547_p8 = pnand %p546_p7, %p540_p4 }
 0x2be   : > { %550 = shalt.err (!%p547_p8)
}
 0x2bf   : > { %s551_s13 = scalar_lea.hbm %s337_s3, 128  ;;  %s555_s18 = scalar_lea.hbm %s793_s2, 256 }
 0x2c0   : > { %p552_p10 = scmp.ne.s32.totalorder %s337_s3, %s551_s13  ;;  %p556_p13 = scmp.lt.s32.totalorder %s337_s3, %s793_s2 }
 0x2c1   : > { %p557_p0 = scmp.lt.s32.totalorder %s555_s18, %s551_s13 }
 0x2c2   : > { %p553_p11 = pnand %p552_p10, %p700_p3 }
 0x2c3   : > { %p558_p1 = por %p557_p0, %p556_p13 }
 0x2c4   : > { %p554_p12 = pneg %p553_p11 }
 0x2c6   : > { %p559_p2 = pnand %p558_p1, %p554_p12 }
 0x2c8   : > { %562 = shalt.err (!%p559_p2)
}
 0x2c9   : > { %456 = dma.vmem_to_hbm [thread:$0]  (%p700_p3), %s340_s4, 128, %s337_s3, %s326_s5  }
 0x2ca PF: > { %p462_p4 = scmp.ge.s32.totalorder %s629_s16, 2  ;;  %s351_s27 = sand.u32 1, %s601_s9  }
 0x2cb   : > { %s352_s12 = scalar_lea.sflag [#allocation5], %s351_s27 }
 0x2cc   : > { %p459_p5 = pnand %p462_p4, %p710_p9 }
 0x2ce   : > { %p460_p6 = pneg %p459_p5 }
 0x2d0   : > { %596 = dma.done.wait (%p460_p6), %s352_s12, 128  }
 0x2d1   : > { %598 = vsyncadd (%p460_p6), %s352_s12, 4294967168  ;;  %s15_s16 = sadd.s32 1, %s629_s16   ;;  %s796_s9 = smov %s605_s10 }
 0x2d2   : > { %p12_p7 = scmp.ge.s32.totalorder %s15_s16, 6   ;;  %s797_s10 = smov %s609_s11 }
 0x2d3   : > { %s798_s11 = smov %s718_s25  ;;  %s799_s12 = smov %s621_s14 }
 0x2d4   : > { %s800_s13 = smov %s625_s15  ;;  %s801_s14 = smov %s804_s19 }
 0x2d5   : > { %s802_s15 = smov %s808_s20  ;;  %14 = sbr.rel (!%p12_p7) target bundleno = 5 (0x5), region = 74 }
 0x2da   :  { %357 = vsyncpa [#allocation5], 1 }
 0x2db   :  { %359 = vsyncpa [#allocation5 + $0x1], 1 }

</bundles_post_ra>
